<compile_context>
chip_gen: v5e
topology: v5e:2x2
jax: 0.10.0
libtpu: 0.0.40
codegen_flags: <defaults>
</compile_context>

<pallas_src>
import functools

import jax
import jax.numpy as jnp
import numpy as np
from jax.experimental import pallas as pl
from jax.experimental.pallas import tpu as pltpu

_EPS = 1e-5


def _round_up(x, m):
    return ((x + m - 1) // m) * m


# -----------------------------------------------------------------------------
# Kernel bodies
# -----------------------------------------------------------------------------
def _ln_relu(x, s1, gamma, beta, n):
    """relu(LayerNorm(x)); s1 = row-sum(x) comes from the folded matmul column."""
    inv_n = 1.0 / float(n)
    mu = s1 * inv_n
    xc = x - mu                                            # needed for output anyway
    var = jnp.sum(xc * xc, axis=-1, keepdims=True) * inv_n  # two-pass: robust
    y = xc * jax.lax.rsqrt(var + _EPS) * gamma + beta
    return jnp.maximum(y, 0.0)


def _critic_tail(x1_lin, s1_lin, a_lin, w2p_ref, vecs_ref, out_ref, *, h1, h2):
    """Everything after the first-stage matmul(s).

    x1_lin : [tb, h1]  state @ W1         (bias not yet added)
    s1_lin : [tb, 1]   state @ (W1 @ 1)   (row-sum of x1_lin, from the fold column)
    a_lin  : [tb, h2]  action @ Wa        (bias not yet added)
    """
    v = vecs_ref[...]                                   # [16, maxw] — one load
    b1, g1, be1 = v[0:1, :h1], v[1:2, :h1], v[2:3, :h1]
    sum_b1, sum_b2, bq = v[3:4, 0:1], v[3:4, 1:2], v[3:4, 2:3]
    b2, g2, be2 = v[8:9, :h2], v[9:10, :h2], v[10:11, :h2]
    ba, wq = v[11:12, :h2], v[12:13, :h2]

    # hiddenlayer1 -> bn1 -> relu (mean comes from the folded matmul column).
    x = _ln_relu(x1_lin + b1, s1_lin + sum_b1, g1, be1, h1)

    # hiddenlayer2 -> bn2 -> relu (w2p carries its own fold column at [:, h2]).
    z = jnp.dot(x, w2p_ref[...], preferred_element_type=jnp.float32)
    x = _ln_relu(z[:, :h2] + b2, z[:, h2:h2 + 1] + sum_b2, g2, be2, h2)

    # Action branch kept late (only the raw linear slice stays live), add, relu.
    a = jnp.maximum(a_lin + ba, 0.0)
    x = jnp.maximum(x + a, 0.0)

    # Q head (N=1): VPU multiply + one lane reduction instead of an MXU matmul.
    q = jnp.sum(x * wq, axis=-1, keepdims=True) + bq
    out_ref[...] = q.astype(out_ref.dtype)


def critic_kernel_fused(sa_ref, wcat_ref, w2p_ref, vecs_ref, out_ref,
                        *, h1, h2, h1p):
    # One MXU pass over [state | action] @ [[W1 | W1@1 | 0], [0, Wa]].
    xa = jnp.dot(sa_ref[...], wcat_ref[...], preferred_element_type=jnp.float32)
    _critic_tail(xa[:, :h1], xa[:, h1:h1 + 1], xa[:, h1p:h1p + h2],
                 w2p_ref, vecs_ref, out_ref, h1=h1, h2=h2)


def critic_kernel_split(s_ref, a_ref, w1s_ref, wa_ref, w2p_ref, vecs_ref, out_ref,
                        *, h1, h2):
    # Two separate matmuls (v5e-friendly once h1 + h2 exceeds the MXU width).
    xs = jnp.dot(s_ref[...], w1s_ref[...], preferred_element_type=jnp.float32)
    al = jnp.dot(a_ref[...], wa_ref[...], preferred_element_type=jnp.float32)
    _critic_tail(xs[:, :h1], xs[:, h1:h1 + 1], al,
                 w2p_ref, vecs_ref, out_ref, h1=h1, h2=h2)


# -----------------------------------------------------------------------------
# Parameter packing
# -----------------------------------------------------------------------------
def prepare_params(raw, state_dim, action_size, fuse_max_width=128):
    """One-time packing of parameters into the fused/packed kernel layout."""
    f32 = jnp.float32
    w1 = jnp.asarray(raw["w1"], f32)          # [sd, h1]
    w2 = jnp.asarray(raw["w2"], f32)          # [h1, h2]
    wa = jnp.asarray(raw["wa"], f32)          # [asz, h2]
    h1, h2 = int(w1.shape[1]), int(w2.shape[1])

    # LN mean-fold columns: s1 = x @ (W @ 1) + sum(b).
    w1s = jnp.concatenate([w1, jnp.sum(w1, axis=1, keepdims=True)], axis=1)  # [sd, h1+1]
    w2p = jnp.concatenate([w2, jnp.sum(w2, axis=1, keepdims=True)], axis=1)  # [h1, h2+1]

    fused = (h1 + h2) <= int(fuse_max_width)
    if fused:
        # Block-diagonal fused first stage; W1 block padded to a lane-tile
        # multiple so the action block starts on a 128-lane boundary.
        h1p = _round_up(h1 + 1, 128)
        wcat = jnp.zeros((state_dim + action_size, h1p + h2), f32)
        wcat = wcat.at[:state_dim, :h1 + 1].set(w1s)
        wcat = wcat.at[state_dim:, h1p:].set(wa)
    else:
        h1p = h1 + 1
        wcat = w1s

    # Packed 1-row parameters, 16 rows so the LN1 group (rows 0..3) and the
    # LN2/action/head group (rows 8..12) sit in separate sublane tiles.
    maxw = _round_up(max(h1, h2), 128)

    def row(vec, width):
        r = jnp.zeros((maxw,), f32)
        return r.at[:width].set(jnp.reshape(jnp.asarray(vec, f32), (-1,)))

    zero = jnp.zeros((maxw,), f32)
    scalars = jnp.stack([jnp.sum(jnp.asarray(raw["b1"], f32)),
                         jnp.sum(jnp.asarray(raw["b2"], f32)),
                         jnp.reshape(jnp.asarray(raw["bq"], f32), ())])
    vecs = jnp.stack([
        row(raw["b1"], h1), row(raw["g1"], h1), row(raw["be1"], h1),
        row(scalars, 3), zero, zero, zero, zero,
        row(raw["b2"], h2), row(raw["g2"], h2), row(raw["be2"], h2),
        row(raw["ba"], h2), row(raw["wq"], h2),
        zero, zero, zero,
    ])

    packed = {"fused": fused, "h1": h1, "h2": h2, "h1p": h1p,
              "wcat": wcat, "w2p": w2p, "vecs": vecs}
    if not fused:
        packed["wa"] = wa
    return packed


# -----------------------------------------------------------------------------
# Wrapper
# -----------------------------------------------------------------------------
def _pick_tile_b(B):
    """Batch tile: <= 512 rows, minimal padding, and >= 2 grid steps once B > 16
    so the 'parallel' batch axis can shard across both TensorCores on v7x."""
    b8 = _round_up(max(int(B), 1), 8)
    if b8 <= 16:
        return b8
    n_tiles = max(2, -(-b8 // 512))
    return _round_up(-(-b8 // n_tiles), 8)


def critic_forward(state, action, packed, tile_b=None):
    B, sd = state.shape
    asz = action.shape[1]
    h1, h2, h1p, fused = packed["h1"], packed["h2"], packed["h1p"], packed["fused"]

    if tile_b is None:
        tile_b = _pick_tile_b(B)
    tile_b = max(8, min(_round_up(int(tile_b), 8), _round_up(B, 8)))
    Bp = _round_up(B, tile_b)
    grid = (Bp // tile_b,)

    state = state.astype(jnp.float32)
    action = action.astype(jnp.float32)

    def pad_rows(x):
        return jnp.pad(x, ((0, Bp - B), (0, 0))) if Bp != B else x

    if fused:
        sa = pad_rows(jnp.concatenate([state, action], axis=1))
        operands = (sa, packed["wcat"], packed["w2p"], packed["vecs"])
        in_specs = [
            pl.BlockSpec((tile_b, sd + asz), lambda i: (i, 0)),
            # Weights/params: constant index_map -> VMEM-resident across steps.
            pl.BlockSpec(packed["wcat"].shape, lambda i: (0, 0)),
            pl.BlockSpec(packed["w2p"].shape, lambda i: (0, 0)),
            pl.BlockSpec(packed["vecs"].shape, lambda i: (0, 0)),
        ]
        kernel = functools.partial(critic_kernel_fused, h1=h1, h2=h2, h1p=h1p)
        weight_keys = ("wcat", "w2p", "vecs")
    else:
        operands = (pad_rows(state), pad_rows(action), packed["wcat"],
                    packed["wa"], packed["w2p"], packed["vecs"])
        in_specs = [
            pl.BlockSpec((tile_b, sd), lambda i: (i, 0)),
            pl.BlockSpec((tile_b, asz), lambda i: (i, 0)),
            pl.BlockSpec(packed["wcat"].shape, lambda i: (0, 0)),
            pl.BlockSpec(packed["wa"].shape, lambda i: (0, 0)),
            pl.BlockSpec(packed["w2p"].shape, lambda i: (0, 0)),
            pl.BlockSpec(packed["vecs"].shape, lambda i: (0, 0)),
        ]
        kernel = functools.partial(critic_kernel_split, h1=h1, h2=h2)
        weight_keys = ("wcat", "wa", "w2p", "vecs")

    # Scoped-VMEM budget: streamed tiles (double-buffered) + resident weights,
    # capped at 64 MiB so the value is legal on v5e/v6e/v7x alike.
    stream_bytes = 4 * tile_b * (sd + asz + 1)
    weight_bytes = sum(int(np.prod(packed[k].shape)) * 4 for k in weight_keys)
    est = 2 * stream_bytes + 2 * weight_bytes + (1 << 20)
    vmem_limit = int(min(64 << 20, max(32 << 20, 2 * est)))

    out = pl.pallas_call(
        kernel,
        out_shape=jax.ShapeDtypeStruct((Bp, 1), jnp.float32),
        grid_spec=pltpu.PrefetchScalarGridSpec(
            num_scalar_prefetch=0,
            grid=grid,
            in_specs=in_specs,
            out_specs=pl.BlockSpec((tile_b, 1), lambda i: (i, 0)),
        ),
        compiler_params=pltpu.CompilerParams(
            dimension_semantics=("parallel",),
            vmem_limit_bytes=vmem_limit,
        ),
    )(*operands)
    return out[:B]


# -----------------------------------------------------------------------------
# Reference + synthetic init (mirrors CriticNetwork.__init__ / forward)
# -----------------------------------------------------------------------------
def init_params(key, state_dim, hidden_dim1, hidden_dim2, action_size):
    ks = jax.random.split(key, 8)
    h1 = 1.0 / np.sqrt(hidden_dim1)   # torch: 1/sqrt(weight.size()[0]) = out_features
    h2 = 1.0 / np.sqrt(hidden_dim2)
    ka = 1.0 / np.sqrt(action_size)   # torch default Linear bound = 1/sqrt(in_features)
    fq = 0.003

    def U(k, shape, bound):
        return jax.random.uniform(k, shape, jnp.float32, -bound, bound)

    return {
        "w1": U(ks[0], (state_dim, hidden_dim1), h1),
        "b1": U(ks[1], (hidden_dim1,), h1),
        "g1": jnp.ones((hidden_dim1,), jnp.float32),
        "be1": jnp.zeros((hidden_dim1,), jnp.float32),
        "w2": U(ks[2], (hidden_dim1, hidden_dim2), h2),
        "b2": U(ks[3], (hidden_dim2,), h2),
        "g2": jnp.ones((hidden_dim2,), jnp.float32),
        "be2": jnp.zeros((hidden_dim2,), jnp.float32),
        "wa": U(ks[4], (action_size, hidden_dim2), ka),
        "ba": U(ks[5], (hidden_dim2,), ka),
        "wq": U(ks[6], (hidden_dim2,), fq),   # Q-head weight stored as a row
        "bq": U(ks[7], (1,), fq),
    }


def reference_forward(state, action, p):
    """Plain-JAX reference mirroring the PyTorch forward (unfused, unpacked)."""
    def ln(x, g, b):
        mu = jnp.mean(x, axis=-1, keepdims=True)
        var = jnp.mean((x - mu) ** 2, axis=-1, keepdims=True)
        return (x - mu) / jnp.sqrt(var + _EPS) * g + b

    x = state @ p["w1"] + p["b1"][None, :]
    x = jax.nn.relu(ln(x, p["g1"][None, :], p["be1"][None, :]))
    x = x @ p["w2"] + p["b2"][None, :]
    x = jax.nn.relu(ln(x, p["g2"][None, :], p["be2"][None, :]))
    a = jax.nn.relu(action @ p["wa"] + p["ba"][None, :])
    x = jax.nn.relu(x + a)
    return x @ p["wq"][:, None] + p["bq"][None, :]


def _run_case(key, B, state_dim, hidden_dim1, hidden_dim2, action_size):
    k_s, k_a, k_p = jax.random.split(key, 3)
    state = jax.random.normal(k_s, (B, state_dim), jnp.float32)
    action = jax.random.normal(k_a, (B, action_size), jnp.float32)
    raw = init_params(k_p, state_dim, hidden_dim1, hidden_dim2, action_size)
    packed = prepare_params(raw, state_dim, action_size)

    q = jax.block_until_ready(critic_forward(state, action, packed))
    q_ref = reference_forward(state, action, raw)
    np.testing.assert_allclose(np.asarray(q), np.asarray(q_ref), rtol=2e-5, atol=2e-5)
    assert q.shape == (B, 1) and q.dtype == jnp.float32
    return packed["fused"]


if __name__ == "__main__":
    key = jax.random.PRNGKey(0)
    k1, k2 = jax.random.split(key)
    # Small config: fused block-diagonal first stage (h1 + h2 <= 128), grid (1,).
    fused = _run_case(k1, B=8, state_dim=16, hidden_dim1=32, hidden_dim2=32,
                      action_size=4)
    assert fused
    # Larger hidden dims: split (v5e-safe) path, 2-step batch grid with padding.
    fused = _run_case(k2, B=20, state_dim=12, hidden_dim1=96, hidden_dim2=80,
                      action_size=6)
    assert not fused
    print("KERNEL_OK")
</pallas_src>

<mosaic_0001>
module attributes {stable_mosaic.version = 11 : i64} {
  func.func @critic_kernel_fused(%arg0: i32, %arg1: memref<8x20xf32, #tpu.memory_space<vmem>>, %arg2: memref<20x160xf32, #tpu.memory_space<vmem>>, %arg3: memref<32x33xf32, #tpu.memory_space<vmem>>, %arg4: memref<16x128xf32, #tpu.memory_space<vmem>>, %arg5: memref<8x1xf32, #tpu.memory_space<vmem>>) attributes {dimension_semantics = [#tpu.dimension_semantics<parallel>], iteration_bounds = array<i64: 1>, scalar_prefetch = 0 : i64, scratch_operands = 0 : i64, tpu.core_type = #tpu.core_type<tc>, window_params = [{transform_indices = @transform_0, window_bounds = array<i64: 8, 20>}, {pipeline_mode = #tpu.pipeline_mode<synchronous>, transform_indices = @transform_1, window_bounds = array<i64: 20, 160>}, {pipeline_mode = #tpu.pipeline_mode<synchronous>, transform_indices = @transform_2, window_bounds = array<i64: 32, 33>}, {pipeline_mode = #tpu.pipeline_mode<synchronous>, transform_indices = @transform_3, window_bounds = array<i64: 16, 128>}, {transform_indices = @transform_4, window_bounds = array<i64: 8, 1>}]} {
    %c0 = arith.constant 0 : index
    %c0_0 = arith.constant 0 : index
    %0 = vector.load %arg1[%c0, %c0_0] : memref<8x20xf32, #tpu.memory_space<vmem>>, vector<8x20xf32>
    %c0_1 = arith.constant 0 : index
    %c0_2 = arith.constant 0 : index
    %1 = vector.load %arg2[%c0_1, %c0_2] : memref<20x160xf32, #tpu.memory_space<vmem>>, vector<20x160xf32>
    %cst = arith.constant dense<0.000000e+00> : vector<8x160xf32>
    %2 = tpu.matmul %0, %1, %cst {dimension_numbers = #tpu.dot_dimension_numbers<[1], [0], [0], [1], [0, 0, 1, 1], [], []>} : vector<8x20xf32>, vector<20x160xf32>, vector<8x160xf32> -> vector<8x160xf32>
    %3 = vector.extract_strided_slice %2 {offsets = [0, 0], sizes = [8, 32], strides = [1, 1]} : vector<8x160xf32> to vector<8x32xf32>
    %4 = vector.extract_strided_slice %2 {offsets = [0, 32], sizes = [8, 1], strides = [1, 1]} : vector<8x160xf32> to vector<8x1xf32>
    %5 = vector.extract_strided_slice %2 {offsets = [0, 128], sizes = [8, 32], strides = [1, 1]} : vector<8x160xf32> to vector<8x32xf32>
    %c0_3 = arith.constant 0 : index
    %c0_4 = arith.constant 0 : index
    %6 = vector.load %arg4[%c0_3, %c0_4] : memref<16x128xf32, #tpu.memory_space<vmem>>, vector<16x128xf32>
    %7 = vector.extract_strided_slice %6 {offsets = [0, 0], sizes = [1, 32], strides = [1, 1]} : vector<16x128xf32> to vector<1x32xf32>
    %8 = vector.extract_strided_slice %6 {offsets = [1, 0], sizes = [1, 32], strides = [1, 1]} : vector<16x128xf32> to vector<1x32xf32>
    %9 = vector.extract_strided_slice %6 {offsets = [2, 0], sizes = [1, 32], strides = [1, 1]} : vector<16x128xf32> to vector<1x32xf32>
    %10 = vector.extract_strided_slice %6 {offsets = [3, 0], sizes = [1, 1], strides = [1, 1]} : vector<16x128xf32> to vector<1x1xf32>
    %11 = vector.extract_strided_slice %6 {offsets = [3, 1], sizes = [1, 1], strides = [1, 1]} : vector<16x128xf32> to vector<1x1xf32>
    %12 = vector.extract_strided_slice %6 {offsets = [3, 2], sizes = [1, 1], strides = [1, 1]} : vector<16x128xf32> to vector<1x1xf32>
    %13 = vector.extract_strided_slice %6 {offsets = [8, 0], sizes = [1, 32], strides = [1, 1]} : vector<16x128xf32> to vector<1x32xf32>
    %14 = vector.extract_strided_slice %6 {offsets = [9, 0], sizes = [1, 32], strides = [1, 1]} : vector<16x128xf32> to vector<1x32xf32>
    %15 = vector.extract_strided_slice %6 {offsets = [10, 0], sizes = [1, 32], strides = [1, 1]} : vector<16x128xf32> to vector<1x32xf32>
    %16 = vector.extract_strided_slice %6 {offsets = [11, 0], sizes = [1, 32], strides = [1, 1]} : vector<16x128xf32> to vector<1x32xf32>
    %17 = vector.extract_strided_slice %6 {offsets = [12, 0], sizes = [1, 32], strides = [1, 1]} : vector<16x128xf32> to vector<1x32xf32>
    %18 = vector.broadcast %7 : vector<1x32xf32> to vector<8x32xf32>
    %19 = arith.addf %3, %18 : vector<8x32xf32>
    %20 = vector.broadcast %10 : vector<1x1xf32> to vector<8x1xf32>
    %21 = arith.addf %4, %20 : vector<8x1xf32>
    %cst_5 = arith.constant 3.125000e-02 : f32
    %22 = vector.broadcast %cst_5 : f32 to vector<8x1xf32>
    %23 = arith.mulf %21, %22 : vector<8x1xf32>
    %24 = vector.broadcast %23 : vector<8x1xf32> to vector<8x32xf32>
    %25 = arith.subf %19, %24 : vector<8x32xf32>
    %26 = arith.mulf %25, %25 : vector<8x32xf32>
    %cst_6 = arith.constant dense<0.000000e+00> : vector<8xf32>
    %27 = vector.multi_reduction <add>, %26, %cst_6 [1] : vector<8x32xf32> to vector<8xf32>
    %28 = vector.shape_cast %27 : vector<8xf32> to vector<8x1xf32>
    %cst_7 = arith.constant 3.125000e-02 : f32
    %29 = vector.broadcast %cst_7 : f32 to vector<8x1xf32>
    %30 = arith.mulf %28, %29 : vector<8x1xf32>
    %cst_8 = arith.constant 9.99999974E-6 : f32
    %31 = vector.broadcast %cst_8 : f32 to vector<8x1xf32>
    %32 = arith.addf %30, %31 : vector<8x1xf32>
    %33 = math.rsqrt %32 : vector<8x1xf32>
    %34 = vector.broadcast %33 : vector<8x1xf32> to vector<8x32xf32>
    %35 = arith.mulf %25, %34 : vector<8x32xf32>
    %36 = vector.broadcast %8 : vector<1x32xf32> to vector<8x32xf32>
    %37 = arith.mulf %35, %36 : vector<8x32xf32>
    %38 = vector.broadcast %9 : vector<1x32xf32> to vector<8x32xf32>
    %39 = arith.addf %37, %38 : vector<8x32xf32>
    %cst_9 = arith.constant 0.000000e+00 : f32
    %40 = vector.broadcast %cst_9 : f32 to vector<8x32xf32>
    %41 = arith.maximumf %39, %40 : vector<8x32xf32>
    %c0_10 = arith.constant 0 : index
    %c0_11 = arith.constant 0 : index
    %42 = vector.load %arg3[%c0_10, %c0_11] : memref<32x33xf32, #tpu.memory_space<vmem>>, vector<32x33xf32>
    %cst_12 = arith.constant dense<0.000000e+00> : vector<8x33xf32>
    %43 = tpu.matmul %41, %42, %cst_12 {dimension_numbers = #tpu.dot_dimension_numbers<[1], [0], [0], [1], [0, 0, 1, 1], [], []>} : vector<8x32xf32>, vector<32x33xf32>, vector<8x33xf32> -> vector<8x33xf32>
    %44 = vector.extract_strided_slice %43 {offsets = [0, 0], sizes = [8, 32], strides = [1, 1]} : vector<8x33xf32> to vector<8x32xf32>
    %45 = vector.broadcast %13 : vector<1x32xf32> to vector<8x32xf32>
    %46 = arith.addf %44, %45 : vector<8x32xf32>
    %47 = vector.extract_strided_slice %43 {offsets = [0, 32], sizes = [8, 1], strides = [1, 1]} : vector<8x33xf32> to vector<8x1xf32>
    %48 = vector.broadcast %11 : vector<1x1xf32> to vector<8x1xf32>
    %49 = arith.addf %47, %48 : vector<8x1xf32>
    %cst_13 = arith.constant 3.125000e-02 : f32
    %50 = vector.broadcast %cst_13 : f32 to vector<8x1xf32>
    %51 = arith.mulf %49, %50 : vector<8x1xf32>
    %52 = vector.broadcast %51 : vector<8x1xf32> to vector<8x32xf32>
    %53 = arith.subf %46, %52 : vector<8x32xf32>
    %54 = arith.mulf %53, %53 : vector<8x32xf32>
    %cst_14 = arith.constant dense<0.000000e+00> : vector<8xf32>
    %55 = vector.multi_reduction <add>, %54, %cst_14 [1] : vector<8x32xf32> to vector<8xf32>
    %56 = vector.shape_cast %55 : vector<8xf32> to vector<8x1xf32>
    %cst_15 = arith.constant 3.125000e-02 : f32
    %57 = vector.broadcast %cst_15 : f32 to vector<8x1xf32>
    %58 = arith.mulf %56, %57 : vector<8x1xf32>
    %cst_16 = arith.constant 9.99999974E-6 : f32
    %59 = vector.broadcast %cst_16 : f32 to vector<8x1xf32>
    %60 = arith.addf %58, %59 : vector<8x1xf32>
    %61 = math.rsqrt %60 : vector<8x1xf32>
    %62 = vector.broadcast %61 : vector<8x1xf32> to vector<8x32xf32>
    %63 = arith.mulf %53, %62 : vector<8x32xf32>
    %64 = vector.broadcast %14 : vector<1x32xf32> to vector<8x32xf32>
    %65 = arith.mulf %63, %64 : vector<8x32xf32>
    %66 = vector.broadcast %15 : vector<1x32xf32> to vector<8x32xf32>
    %67 = arith.addf %65, %66 : vector<8x32xf32>
    %cst_17 = arith.constant 0.000000e+00 : f32
    %68 = vector.broadcast %cst_17 : f32 to vector<8x32xf32>
    %69 = arith.maximumf %67, %68 : vector<8x32xf32>
    %70 = vector.broadcast %16 : vector<1x32xf32> to vector<8x32xf32>
    %71 = arith.addf %5, %70 : vector<8x32xf32>
    %cst_18 = arith.constant 0.000000e+00 : f32
    %72 = vector.broadcast %cst_18 : f32 to vector<8x32xf32>
    %73 = arith.maximumf %71, %72 : vector<8x32xf32>
    %74 = arith.addf %69, %73 : vector<8x32xf32>
    %cst_19 = arith.constant 0.000000e+00 : f32
    %75 = vector.broadcast %cst_19 : f32 to vector<8x32xf32>
    %76 = arith.maximumf %74, %75 : vector<8x32xf32>
    %77 = vector.broadcast %17 : vector<1x32xf32> to vector<8x32xf32>
    %78 = arith.mulf %76, %77 : vector<8x32xf32>
    %cst_20 = arith.constant dense<0.000000e+00> : vector<8xf32>
    %79 = vector.multi_reduction <add>, %78, %cst_20 [1] : vector<8x32xf32> to vector<8xf32>
    %80 = vector.shape_cast %79 : vector<8xf32> to vector<8x1xf32>
    %81 = vector.broadcast %12 : vector<1x1xf32> to vector<8x1xf32>
    %82 = arith.addf %80, %81 : vector<8x1xf32>
    %c0_21 = arith.constant 0 : index
    %c0_22 = arith.constant 0 : index
    %83 = vector.load %arg5[%c0_21, %c0_22] : memref<8x1xf32, #tpu.memory_space<vmem>>, vector<8x1xf32>
    tpu.vector_store %arg5[%c0_21, %c0_22], %82 {strides = array<i32>} : memref<8x1xf32, #tpu.memory_space<vmem>>, vector<8x1xf32>,
    return
  }
  func.func @transform_0(%arg0: i32) -> (i32, i32) {
    %c0_i32 = arith.constant 0 : i32
    %c0_i32_0 = arith.constant 0 : i32
    return %arg0, %c0_i32 : i32, i32
  }
  func.func @transform_1(%arg0: i32) -> (i32, i32) {
    %c0_i32 = arith.constant 0 : i32
    %c0_i32_0 = arith.constant 0 : i32
    %c0_i32_1 = arith.constant 0 : i32
    return %c0_i32, %c0_i32_0 : i32, i32
  }
  func.func @transform_2(%arg0: i32) -> (i32, i32) {
    %c0_i32 = arith.constant 0 : i32
    %c0_i32_0 = arith.constant 0 : i32
    %c0_i32_1 = arith.constant 0 : i32
    return %c0_i32, %c0_i32_0 : i32, i32
  }
  func.func @transform_3(%arg0: i32) -> (i32, i32) {
    %c0_i32 = arith.constant 0 : i32
    %c0_i32_0 = arith.constant 0 : i32
    %c0_i32_1 = arith.constant 0 : i32
    return %c0_i32, %c0_i32_0 : i32, i32
  }
  func.func @transform_4(%arg0: i32) -> (i32, i32) {
    %c0_i32 = arith.constant 0 : i32
    %c0_i32_0 = arith.constant 0 : i32
    return %arg0, %c0_i32 : i32, i32
  }
}

</mosaic_0001>

<bundles_post_ra>
// kernel: tpu_custom_call.1
= control target key start
LH: loop header
LB: loop body
LE: loop exit
PB: predicated region body
PF: predicated region fallthrough
CT: control target
= control target key end

     0   :  { %9 = vsyncpa [#allocation3], 0  ;;  %s456_s0 = inlined_call_operand.hbm [shape: f32[8,20], index: 0, kind: input, shape index: {}]   ;;  %s457_s1 = inlined_call_operand.hbm [shape: f32[20,160], index: 1, kind: input, shape index: {}]   ;;  %s458_s2 = inlined_call_operand.hbm [shape: f32[32,33], index: 2, kind: input, shape index: {}]   ;;  %s459_s3 = inlined_call_operand.hbm [shape: f32[16,128], index: 3, kind: input, shape index: {}]   ;;  %s460_s4 = inlined_call_operand.vmem [shape: f32[8,1], index: 4, kind: output, shape index: {}]  }
   0x1   :  { %10 = vsyncpa [#allocation5], 0  ;;  %s27_s17 = sshll.u32 %s457_s1, 4  ;;  %s28_s17 = int_to_ptr.hbm [resolvable:$true] %s27_s17 }
   0x2   :  { %11 = vsyncpa [#allocation8], 0  ;;  %s387_s18 = smov [#allocation4]   ;;  %s17_s22 = sshll.u32 %s456_s0, 4  ;;  %s18_s22 = int_to_ptr.hbm [resolvable:$true] %s17_s22 }
   0x3   :  { %s29_s19 = sshll.u32 %s387_s18, 4  ;;  %s388_s23 = smov 256   ;;  %s30_s19 = int_to_ptr.vmem [resolvable:$true] %s29_s19 }
   0x4   :  { %s389_s24 = smov 16   ;;  %s390_s25 = smov [#allocation2]  }
   0x5   :  { %35 = dma.hbm_to_vmem [thread:$0]  %s28_s17, 768, %s30_s19, [#allocation5], %s388_s23, %s388_s23, %s389_s24  }
   0x6   :  { %s19_s26 = sshll.u32 %s390_s25, 4  ;;  %s40_s29 = sshll.u32 %s458_s2, 4  ;;  %s20_s26 = int_to_ptr.vmem [resolvable:$true] %s19_s26  ;;  %s41_s29 = int_to_ptr.hbm [resolvable:$true] %s40_s29 }
   0x7   :  { %22 = dma.hbm_to_vmem [thread:$0]  %s18_s22, 128, %s20_s26, [#allocation3]  }
   0x8   :  { %s391_s1 = smov [#allocation6]   ;;  %s53_s0 = sshll.u32 %s459_s3, 4  ;;  %s54_s0 = int_to_ptr.hbm [resolvable:$true] %s53_s0 }
   0x9   :  { %s42_s30 = sshll.u32 %s391_s1, 4  ;;  %s392_s7 = smov 128   ;;  %s43_s30 = int_to_ptr.vmem [resolvable:$true] %s42_s30 }
   0xa   :  { %s393_s8 = smov 8   ;;  %s394_s9 = smov [#allocation7]  }
   0xb   :  { %48 = dma.hbm_to_vmem [thread:$0]  %s41_s29, 512, %s43_s30, [#allocation5], %s392_s7, %s392_s7, %s393_s8  }
   0xc   :  { %s55_s10 = sshll.u32 %s394_s9, 4  ;;  %s56_s10 = int_to_ptr.vmem [resolvable:$true] %s55_s10 }
   0xd   :  { %61 = dma.hbm_to_vmem [thread:$0]  %s54_s0, 256, %s56_s10, [#allocation8], %s392_s7, %s392_s7, %s393_s8  }
   0xe   :  { %381 = dma.done.wait [#allocation3], 128  }
   0xf   :  { %382 = vsyncadd [#allocation3], 4294967168 }
  0x10   :  { %383 = dma.done.wait [#allocation5], 1280  }
  0x11   :  { %384 = vsyncadd [#allocation5], 4294966016 }
  0x12   :  { %385 = dma.done.wait [#allocation8], 256  }
  0x13   :  { %386 = vsyncadd [#allocation8], 4294967040  ;;  %vm89_vm0 = vcmask 1043456   ;;  %v83_v0 = vld [vmem:[#allocation4 + $0x20] sm:$0xf]  ;;  %v81_v1 = vld [vmem:[#allocation4 + $0x10] sm:$0xff] }
  0x14   :  { %262 = vmatpush.msk.msra.mxu0 %vm89_vm0, %v83_v0  ;;  %v136_v2 = vld [vmem:[#allocation7] sm:$0xff]  ;;  %v79_v3 = vld [vmem:[#allocation4] sm:$0xff]  ;;  %v439_v5 = vld [vmem:[#allocation2] sm:$0xff]  ;;  %vm85_vm1 = vcmask 162816   ;;  %s395_s2 = smov 32   ;;  %v396_v6 = vmov 32  }
  0x15   :  { %v437_v4 = vperm.slane %v136_v2, 3  ;;  %279 = vset.pattern.permute.xlu0 %v396_v6  ;;  %280 = vset.pattern.permute.xlu2 %v396_v6  ;;  %v138_v11 = vperm.slane %v136_v2, 0  ;;  %vm154_vm2 = vcmask 261120   ;;  %s397_s3 = smov 31   ;;  %v179_v17 = vld [vmem:[#allocation6 + $0x18] sm:$0xff]  ;;  %v178_v18 = vld [vmem:[#allocation6 + $0x10] sm:$0xff] }
  0x16   :  { %110 = vmatpush.msra.mxu0 %v81_v1  ;;  %195 = vmatpush.msra.mxu2 %v179_v17  ;;  %v177_v19 = vld [vmem:[#allocation6 + $0x8] sm:$0xff]  ;;  %v176_v20 = vld [vmem:[#allocation6] sm:$0xff]  ;;  %v171_v30 = vperm.slane %v136_v2, 1  ;;  %v173_v33 = vperm.slane %v136_v2, 2  ;;  %v84_v41 = vld [vmem:[#allocation4 + $0x28] sm:$0xf] }
  0x17   :  { %142 = vrot.lane.b32.xlu0 %v437_v4, %s395_s2  ;;  %v82_v42 = vld [vmem:[#allocation4 + $0x18] sm:$0xff]  ;;  %264 = vmatpush.msk.msra.mxu1 %vm89_vm0, %v84_v41  ;;  %v80_v43 = vld [vmem:[#allocation4 + $0x8] sm:$0xff]  ;;  %s398_s11 = smov 126   ;;  %vm253_vm9 = vcmask 7168  }
  0x18   :  { %111 = vmatpush.msra.mxu0 %v79_v3  ;;  %196 = vmatpush.msra.mxu2 %v178_v18  ;;  %v137_v44 = vld [vmem:[#allocation7 + $0x8] sm:$0xff] }
  0x19   :  { %263 = vmatmul.msk.f32.vlgmr.msra.gmra.mxu0 %vm85_vm1, %v439_v5  ;;  %130 = vmatpush.msra.mxu1 %v82_v42  ;;  %v203_v45 = vperm.slane %v137_v44, 0  ;;  %v238_v59 = vperm.slane %v137_v44, 3  ;;  %v233_v62 = vperm.slane %v137_v44, 1  ;;  %v235_v1 = vperm.slane %v137_v44, 2 }
  0x1a   :  { %197 = vmatpush.msra.mxu2 %v177_v19 }
  0x1b   :  { %131 = vmatpush.msra.mxu1 %v80_v43 }
  0x1c   :  { %198 = vmatpush.msra.mxu2 %v176_v20  ;;  %265 = vmatmul.msk.f32.vlgmr.msra.gmra.mxu1 %vm85_vm1, %v439_v5 }
  0x89   :  { %v143_v7 = vpop.permute.xlu0 %142 }
  0x96   :  { %v113_v8 = vpop.f32.mrf.mxu0 }
  0x97   :  { %v145_v9 = vadd.f32 %v143_v7, %v113_v8  ;;  %v139_v12 = vadd.f32 %v138_v11, %v113_v8 }
  0x99   :  { %v146_v10 = vmul.f32 0.03125, %v145_v9  ;;  %v133_v61 = vpop.f32.mrf.mxu1  ;;  %v243_v9 = vperm.slane %v137_v44, 4 }
  0x9a   :  { %v239_v2 = vadd.f32 %v238_v59, %v133_v61 }
  0x9b   :  { %149 = vperm.xlu0 %279, %v146_v10  }
  0x9c   :  { %v240_v6 = vmax.f32 %v239_v2, 0.0 }
 0x10d   :  { %v150_v13 = vpop.permute.xlu0 %149 }
 0x10e   :  { %v152_v14 = vsub.f32 %v139_v12, %v150_v13 }
 0x110   :  { %v153_v15 = vmul.f32 %v152_v14, %v152_v14 }
 0x112   :  { %v155_v16 = vsel %vm154_vm2, %v153_v15, 0.0 }
 0x113   :  { %156 = vadd.xlane.f32.xlu1 %v155_v16 }
 0x12c   :  { %205 = vrot.lane.b32.xlu1 %v437_v4, %s397_s3 }
 0x186   :  { %v157_v21 = vpop.xlane.xlu1 %156 }
 0x187   :  { %v158_v22 = vmul.f32 0.03125, %v157_v21 }
 0x189   :  { %v159_v23 = vadd.f32 1e-05, %v158_v22 }
 0x18b   :  { %281 = vrsqrt.f32 %v159_v23  ;;  %vm166_vm4 = vweird.f32 %v159_v23 }
 0x191   :  { %v282_v24 = vpop.eup %281 }
 0x192   :  { %v161_v25 = vmul.f32 %v282_v24, %v159_v23  ;;  %vm167_vm3 = vweird.f32 %v282_v24 }
 0x193   :  { %vm168_vm5 = vmor %vm166_vm4, %vm167_vm3 }
 0x194   :  { %v162_v26 = vmul.f32 %v282_v24, %v161_v25 }
 0x196   :  { %v163_v27 = vmul.f32 0.5, %v162_v26 }
 0x198   :  { %v164_v28 = vsub.f32 1.5, %v163_v27 }
 0x19a   :  { %v165_v29 = vmul.f32 %v282_v24, %v164_v28 }
 0x19c   :  { %v169_v31 = vsel %vm168_vm5, %v282_v24, %v165_v29 }
 0x19d   :  { %v170_v32 = vmul.f32 %v169_v31, %v152_v14 }
 0x19e   :  { %v206_v37 = vpop.permute.xlu1 %205 }
 0x19f   :  { %v172_v34 = vmul.f32 %v171_v30, %v170_v32 }
 0x1a1   :  { %v174_v35 = vadd.f32 %v173_v33, %v172_v34 }
 0x1a3   :  { %v175_v36 = vmax.f32 %v174_v35, 0.0 }
 0x1a5   :  { %266 = vmatmul.msk.f32.vlgmr.msra.gmra.mxu2 %vm154_vm2, %v175_v36 }
 0x228   :  { %v200_v38 = vpop.f32.mrf.mxu2 }
 0x229   :  { %v208_v39 = vadd.f32 %v206_v37, %v200_v38  ;;  %v204_v46 = vadd.f32 %v203_v45, %v200_v38 }
 0x22b   :  { %v209_v40 = vmul.f32 0.03125, %v208_v39 }
 0x22d   :  { %212 = vperm.xlu2 %280, %v209_v40  }
 0x287   :  { %v213_v47 = vpop.permute.xlu2 %212 }
 0x288   :  { %v215_v48 = vsub.f32 %v204_v46, %v213_v47 }
 0x28a   :  { %v216_v49 = vmul.f32 %v215_v48, %v215_v48 }
 0x28c   :  { %v217_v50 = vsel %vm154_vm2, %v216_v49, 0.0 }
 0x28d   :  { %218 = vadd.xlane.f32.xlu2 %v217_v50 }
 0x300   :  { %v219_v51 = vpop.xlane.xlu2 %218 }
 0x301   :  { %v220_v52 = vmul.f32 0.03125, %v219_v51 }
 0x303   :  { %v221_v53 = vadd.f32 1e-05, %v220_v52 }
 0x305   :  { %283 = vrsqrt.f32 %v221_v53  ;;  %vm228_vm7 = vweird.f32 %v221_v53 }
 0x30b   :  { %v284_v54 = vpop.eup %283 }
 0x30c   :  { %v223_v55 = vmul.f32 %v284_v54, %v221_v53  ;;  %vm229_vm6 = vweird.f32 %v284_v54 }
 0x30d   :  { %vm230_vm8 = vmor %vm228_vm7, %vm229_vm6 }
 0x30e   :  { %v224_v56 = vmul.f32 %v284_v54, %v223_v55 }
 0x310   :  { %v225_v57 = vmul.f32 0.5, %v224_v56 }
 0x312   :  { %v226_v58 = vsub.f32 1.5, %v225_v57 }
 0x314   :  { %v227_v60 = vmul.f32 %v284_v54, %v226_v58 }
 0x316   :  { %v231_v63 = vsel %vm230_vm8, %v284_v54, %v227_v60 }
 0x317   :  { %v232_v0 = vmul.f32 %v231_v63, %v215_v48 }
 0x319   :  { %v234_v3 = vmul.f32 %v233_v62, %v232_v0 }
 0x31b   :  { %v236_v5 = vadd.f32 %v235_v1, %v234_v3 }
 0x31d   :  { %v237_v7 = vmax.f32 %v236_v5, 0.0 }
 0x31f   :  { %v241_v8 = vadd.f32 %v240_v6, %v237_v7 }
 0x321   :  { %v242_v10 = vmax.f32 %v241_v8, 0.0 }
 0x323   :  { %v244_v11 = vmul.f32 %v243_v9, %v242_v10 }
 0x325   :  { %v245_v12 = vsel %vm154_vm2, %v244_v11, 0.0 }
 0x326   :  { %246 = vadd.xlane.f32.xlu0 %v245_v12 }
 0x399   :  { %v247_v13 = vpop.xlane.xlu0 %246 }
 0x39a   :  { %v248_v14 = vadd.f32 %v247_v13, %v437_v4 }
 0x39c   :  { %250 = vrot.lane.b32.xlu1 %v248_v14, %s398_s11 }
 0x40e   :  { %v251_v15 = vpop.permute.xlu1 %250 }
 0x40f   :  { %254 = vst.msk [vmem:[%s460_s4] sm:$0xff] %vm253_vm9, %v251_v15 }
 0x410   :  { %259 = vsyncpa [#allocation3], 1 }
 0x411   :  { %260 = vsyncpa [#allocation5], 1 }
 0x412   :  { %261 = vsyncpa [#allocation8], 1 }

</bundles_post_ra>
